<compile_context>
chip_gen: v7x
topology: tpu7x:2x2x1
jax: 0.10.0
libtpu: 0.0.40
codegen_flags: <defaults>
</compile_context>

<pallas_src>
import jax
import jax.numpy as jnp
from jax import lax
from jax.experimental import pallas as pl
from jax.experimental.pallas import tpu as pltpu

KH = KW = 4
STRIDE = 2
BN_EPS = 1e-5
LANE = 128


def _round_up(x, m):
    return (x + m - 1) // m * m


def _choose_tile_rows(Ho, Wo, Kp, Cp, target_rows=1024, budget=40 << 20):
    """Pick TH = output image rows per grid step (divisor of Ho).

    TR = TH*Wo output rows are produced per step; aim for ~512-2048 rows while
    keeping the double-buffered working set under `budget` bytes.
    """
    def live_bytes(th):
        tr = th * Wo
        return (2 * tr * Kp * 2          # main packed-x block (bf16, double buffered)
                + 2 * Wo * Kp * 2        # halo slab
                + 2 * 2 * Kp * Cp * 2    # resident packed weights
                + 2 * tr * Cp * 2        # y tile out (bf16)
                + 2 * 8 * Cp * 4         # stats tile
                + tr * Cp * 4)           # f32 accumulator
    divisors = [t for t in range(1, Ho + 1) if Ho % t == 0]
    ok = [t for t in divisors if t * Wo <= target_rows and live_bytes(t) <= budget]
    if ok:
        return max(ok)
    return min(divisors, key=live_bytes)


# ---------------- Pallas kernels ----------------

def _make_conv_stats_kernel(TR, Wo, Cp):
    def kernel(xm_ref, xh_ref, w_ref, y_ref, stats_ref):
        # xm_ref:    (1, TR, Kp)  packed activations for this row tile (bf16)
        # xh_ref:    (1, Wo, Kp)  halo: the Wo packed rows just below the tile (bf16)
        # w_ref:     (2, Kp, Cp)  packed weights (bf16), resident across the grid
        # y_ref:     (1, TR, Cp)  pre-BN conv output (bf16, lane dense)
        # stats_ref: (1, 1, 8, Cp) per-tile BN partials: row0 = sum, row1 = sum(y^2)
        xm = xm_ref[0]
        # taps kh in {0, 1}: same packed rows as the output rows
        acc = jnp.dot(xm, w_ref[0], preferred_element_type=jnp.float32)
        # taps kh in {2, 3}: packed rows shifted down by one output row (= Wo rows)
        if TR > Wo:
            hi = jnp.dot(xm[Wo:], w_ref[1], preferred_element_type=jnp.float32)
            lo = jnp.dot(xh_ref[0], w_ref[1], preferred_element_type=jnp.float32)
            acc = acc + jnp.concatenate([hi, lo], axis=0)
        else:
            acc = acc + jnp.dot(xh_ref[0], w_ref[1],
                                preferred_element_type=jnp.float32)

        # BN partial statistics straight from the f32 accumulator (single pass),
        # written as a full 8-sublane slab so the store is unmasked.
        s1 = jnp.sum(acc, axis=0, keepdims=True)            # (1, Cp)
        s2 = jnp.sum(acc * acc, axis=0, keepdims=True)       # (1, Cp)
        rows = lax.broadcasted_iota(jnp.int32, (8, Cp), 0)
        stats_ref[0, 0] = jnp.where(rows == 0, s1,
                                    jnp.where(rows == 1, s2, 0.0))
        # Single store of the conv result, cast to bf16 for the mem-bound pass 2.
        y_ref[0] = acc.astype(y_ref.dtype)

    return kernel


def _bn_relu_kernel(y_ref, scale_ref, shift_ref, o_ref):
    # y_ref: (1, TR, Cp) bf16; scale/shift: (1, Cp) f32; o_ref: (1, TR, Cp) f32
    z = y_ref[0].astype(jnp.float32) * scale_ref[...] + shift_ref[...]
    o_ref[0] = jnp.maximum(z, 0.0)          # act='relu'
    # (act='leaky' variant would be: jnp.where(z > 0, z, 0.2 * z))


# ---------------- Forward wrapper ----------------

def block_forward(x_nchw, conv_w, gamma, beta):
    """Forward of Block(down=True, act='relu', use_dropout=False). NCHW f32 in/out."""
    N, Cin, H, W = x_nchw.shape
    Cout = conv_w.shape[0]
    assert H % 2 == 0 and W % 2 == 0, "stride-2 conv expects even spatial dims"
    assert (W // 2) % 8 == 0, "W must be a multiple of 16 (8-sublane output tiles)"
    Ho, Wo = H // STRIDE, W // STRIDE
    HoWo = Ho * Wo
    Cp = _round_up(Cout, LANE)          # lane-dense output channels
    Kc = 8 * Cin                        # (ph, kw) taps packed into contraction dim
    Kp = _round_up(Kc, LANE)            # real pix2pix layers (Cin >= 64) give Kp >= 512
    P = (Ho + 1) * Wo                   # packed rows (one extra slab for the kh>=2 halo)

    # --- XLA glue: NCHW -> NHWC, reflect pad, one K-packed activation slab (bf16) ---
    x = jnp.transpose(x_nchw, (0, 2, 3, 1)).astype(jnp.float32)          # (N, H, W, Cin)
    xp = jnp.pad(x, ((0, 0), (1, 1), (1, 1), (0, 0)), mode="reflect")    # (N, H+2, W+2, Cin)
    slabs = []
    for ph in range(2):                     # row parity (kh = ph or ph + 2)
        for kw in range(KW):                # column offset 0..3
            slabs.append(xp[:, ph:ph + 2 * (Ho + 1):2, kw:kw + 2 * Wo:2, :])  # (N, Ho+1, Wo, Cin)
    x_pack = jnp.stack(slabs, axis=3).reshape(N, P, Kc)     # K order: (ph, kw, Cin)
    x_pack = jnp.pad(x_pack, ((0, 0), (0, 0), (0, Kp - Kc))).astype(jnp.bfloat16)

    # conv weight (Cout, Cin, kh, kw) -> (2, Kp, Cp): axis0 = kh // 2, K = (kh%2, kw, Cin)
    w = jnp.transpose(conv_w, (2, 3, 1, 0)).reshape(2, 2, KW, Cin, Cout)
    w = w.reshape(2, Kc, Cout)
    w = jnp.pad(w, ((0, 0), (0, Kp - Kc), (0, Cp - Cout))).astype(jnp.bfloat16)

    # --- tiling: TH output image rows per grid step (TR = TH*Wo packed rows) ---
    TH = _choose_tile_rows(Ho, Wo, Kp, Cp)
    TR = TH * Wo
    T = Ho // TH

    live1 = (2 * TR * Kp * 2 + 2 * Wo * Kp * 2 + 2 * 2 * Kp * Cp * 2
             + 2 * TR * Cp * 2 + 2 * 8 * Cp * 4 + TR * Cp * 4)
    vmem_p1 = int(min(56 << 20, max(24 << 20, 2 * live1)))
    live2 = 2 * TR * Cp * 2 + 2 * TR * Cp * 4 + 4 * Cp * 4
    vmem_p2 = int(min(56 << 20, max(24 << 20, 2 * live2)))

    flops = 2 * N * HoWo * Kp * Cp
    bytes_p1 = (N * T * (TR + Wo) * Kp * 2 + 2 * Kp * Cp * 2
                + N * HoWo * Cp * 2 + N * T * 8 * Cp * 4)

    # --- pass 1: K-packed conv as 2 accumulating MXU matmuls + fused BN partials ---
    y, stats = pl.pallas_call(
        _make_conv_stats_kernel(TR, Wo, Cp),
        out_shape=(jax.ShapeDtypeStruct((N, HoWo, Cp), jnp.bfloat16),
                   jax.ShapeDtypeStruct((N, T, 8, Cp), jnp.float32)),
        grid_spec=pltpu.PrefetchScalarGridSpec(
            num_scalar_prefetch=0,
            grid=(N, T),
            in_specs=[
                # main packed rows for this tile: rows [t*TR, (t+1)*TR)
                pl.BlockSpec((1, TR, Kp), lambda n, t: (n, t, 0)),
                # halo: the Wo-row slab just below the tile (block index counts
                # Wo-row slabs, so slab (t+1)*TH starts at row (t+1)*TR)
                pl.BlockSpec((1, Wo, Kp), lambda n, t: (n, (t + 1) * TH, 0)),
                # resident packed weights: constant block index -> fetched once
                pl.BlockSpec((2, Kp, Cp), lambda n, t: (0, 0, 0)),
            ],
            out_specs=[
                pl.BlockSpec((1, TR, Cp), lambda n, t: (n, t, 0)),
                pl.BlockSpec((1, 1, 8, Cp), lambda n, t: (n, t, 0, 0)),
            ],
        ),
        compiler_params=pltpu.CompilerParams(
            dimension_semantics=("parallel", "parallel"),
            vmem_limit_bytes=vmem_p1),
        cost_estimate=pl.CostEstimate(flops=flops, transcendentals=0,
                                      bytes_accessed=bytes_p1),
    )(x_pack, x_pack, w)

    # --- tiny XLA reduce: BN scale/shift from the fused per-tile partial sums ---
    count = jnp.float32(N * HoWo)
    tot = jnp.sum(stats[:, :, 0:2, :], axis=(0, 1))                 # (2, Cp)
    mean = tot[0, :Cout] / count
    var = jnp.maximum(tot[1, :Cout] / count - mean * mean, 0.0)     # biased batch variance
    inv_std = lax.rsqrt(var + BN_EPS)
    scale_c = gamma.astype(jnp.float32) * inv_std
    shift_c = beta.astype(jnp.float32) - mean * scale_c
    scale = jnp.zeros((1, Cp), jnp.float32).at[0, :Cout].set(scale_c)
    shift = jnp.zeros((1, Cp), jnp.float32).at[0, :Cout].set(shift_c)

    # --- pass 2: fused normalize + ReLU (VPU), row-tiled, lane-dense, bf16 in / f32 out ---
    out = pl.pallas_call(
        _bn_relu_kernel,
        out_shape=jax.ShapeDtypeStruct((N, HoWo, Cp), jnp.float32),
        grid_spec=pltpu.PrefetchScalarGridSpec(
            num_scalar_prefetch=0,
            grid=(N, T),
            in_specs=[
                pl.BlockSpec((1, TR, Cp), lambda n, t: (n, t, 0)),
                pl.BlockSpec((1, Cp), lambda n, t: (0, 0)),
                pl.BlockSpec((1, Cp), lambda n, t: (0, 0)),
            ],
            out_specs=pl.BlockSpec((1, TR, Cp), lambda n, t: (n, t, 0)),
        ),
        compiler_params=pltpu.CompilerParams(
            dimension_semantics=("parallel", "parallel"),
            vmem_limit_bytes=vmem_p2),
    )(y, scale, shift)

    # use_dropout=False -> Dropout is identity.
    # TODO(synk): BatchNorm running_mean/running_var are not updated (forward-only,
    # training-mode batch statistics); NCHW is restored by a final XLA transpose.
    out = out[:, :, :Cout].reshape(N, Ho, Wo, Cout)
    return jnp.transpose(out, (0, 3, 1, 2))                        # NHWC -> NCHW


# ---------------- pure-JAX reference (f32) ----------------

def _reference(x, conv_w, gamma, beta):
    xp = jnp.pad(x, ((0, 0), (0, 0), (1, 1), (1, 1)), mode="reflect")
    y = lax.conv_general_dilated(
        xp, conv_w, window_strides=(STRIDE, STRIDE), padding="VALID",
        dimension_numbers=("NCHW", "OIHW", "NCHW"))
    mean = jnp.mean(y, axis=(0, 2, 3), keepdims=True)
    var = jnp.var(y, axis=(0, 2, 3), keepdims=True)
    z = (y - mean) * lax.rsqrt(var + BN_EPS)
    z = z * gamma.reshape(1, -1, 1, 1) + beta.reshape(1, -1, 1, 1)
    return jnp.maximum(z, 0.0)


if __name__ == "__main__":
    key = jax.random.PRNGKey(0)
    N, Cin, H, W = 2, 4, 16, 16
    Cout = 8

    k1, k2 = jax.random.split(key)
    x = jax.random.normal(k1, (N, Cin, H, W), dtype=jnp.float32)
    fan_in = Cin * KH * KW
    bound = 1.0 / float(fan_in) ** 0.5
    conv_w = jax.random.uniform(k2, (Cout, Cin, KH, KW),
                                minval=-bound, maxval=bound, dtype=jnp.float32)
    gamma = jnp.ones((Cout,), dtype=jnp.float32)   # BatchNorm2d default weight
    beta = jnp.zeros((Cout,), dtype=jnp.float32)   # BatchNorm2d default bias

    out = jax.jit(block_forward)(x, conv_w, gamma, beta)
    jax.block_until_ready(out)
    assert out.shape == (N, Cout, H // 2, W // 2)
    assert bool(jnp.all(jnp.isfinite(out)))

    ref = _reference(x, conv_w, gamma, beta)
    max_err = float(jnp.max(jnp.abs(out - ref)))
    assert max_err < 5e-2, f"max abs error vs f32 reference too large: {max_err}"
    print("KERNEL_OK")
</pallas_src>

<mosaic_0001>
module attributes {stable_mosaic.version = 11 : i64} {
  func.func @kernel(%arg0: i32, %arg1: i32, %arg2: memref<1x64x128xbf16, #tpu.memory_space<vmem>>, %arg3: memref<1x8x128xbf16, #tpu.memory_space<vmem>>, %arg4: memref<2x128x128xbf16, #tpu.memory_space<vmem>>, %arg5: memref<1x64x128xbf16, #tpu.memory_space<vmem>>, %arg6: memref<1x1x8x128xf32, #tpu.memory_space<vmem>>) attributes {dimension_semantics = [#tpu.dimension_semantics<parallel>, #tpu.dimension_semantics<parallel>], iteration_bounds = array<i64: 2, 1>, scalar_prefetch = 0 : i64, scratch_operands = 0 : i64, tpu.core_type = #tpu.core_type<tc>, window_params = [{transform_indices = @transform_0, window_bounds = array<i64: 1, 64, 128>}, {transform_indices = @transform_1, window_bounds = array<i64: 1, 8, 128>}, {pipeline_mode = #tpu.pipeline_mode<synchronous>, transform_indices = @transform_2, window_bounds = array<i64: 2, 128, 128>}, {transform_indices = @transform_3, window_bounds = array<i64: 1, 64, 128>}, {transform_indices = @transform_4, window_bounds = array<i64: 1, 1, 8, 128>}]} {
    %c0 = arith.constant 0 : index
    %c0_0 = arith.constant 0 : index
    %c0_1 = arith.constant 0 : index
    %0 = vector.load %arg2[%c0, %c0_0, %c0_1] : memref<1x64x128xbf16, #tpu.memory_space<vmem>>, vector<1x64x128xbf16>
    %1 = vector.shape_cast %0 : vector<1x64x128xbf16> to vector<64x128xbf16>
    %c0_2 = arith.constant 0 : index
    %c0_3 = arith.constant 0 : index
    %c0_4 = arith.constant 0 : index
    %2 = vector.load %arg4[%c0_2, %c0_3, %c0_4] : memref<2x128x128xbf16, #tpu.memory_space<vmem>>, vector<1x128x128xbf16>
    %3 = vector.shape_cast %2 : vector<1x128x128xbf16> to vector<128x128xbf16>
    %cst = arith.constant dense<0.000000e+00> : vector<64x128xf32>
    %4 = tpu.matmul %1, %3, %cst {dimension_numbers = #tpu.dot_dimension_numbers<[1], [0], [0], [1], [0, 0, 1, 1], [], []>} : vector<64x128xbf16>, vector<128x128xbf16>, vector<64x128xf32> -> vector<64x128xf32>
    %5 = vector.extract_strided_slice %1 {offsets = [8, 0], sizes = [56, 128], strides = [1, 1]} : vector<64x128xbf16> to vector<56x128xbf16>
    %c1 = arith.constant 1 : index
    %c0_5 = arith.constant 0 : index
    %c0_6 = arith.constant 0 : index
    %6 = vector.load %arg4[%c1, %c0_5, %c0_6] : memref<2x128x128xbf16, #tpu.memory_space<vmem>>, vector<1x128x128xbf16>
    %7 = vector.shape_cast %6 : vector<1x128x128xbf16> to vector<128x128xbf16>
    %cst_7 = arith.constant dense<0.000000e+00> : vector<56x128xf32>
    %8 = tpu.matmul %5, %7, %cst_7 {dimension_numbers = #tpu.dot_dimension_numbers<[1], [0], [0], [1], [0, 0, 1, 1], [], []>} : vector<56x128xbf16>, vector<128x128xbf16>, vector<56x128xf32> -> vector<56x128xf32>
    %c0_8 = arith.constant 0 : index
    %c0_9 = arith.constant 0 : index
    %c0_10 = arith.constant 0 : index
    %9 = vector.load %arg3[%c0_8, %c0_9, %c0_10] : memref<1x8x128xbf16, #tpu.memory_space<vmem>>, vector<1x8x128xbf16>
    %10 = vector.shape_cast %9 : vector<1x8x128xbf16> to vector<8x128xbf16>
    %c1_11 = arith.constant 1 : index
    %c0_12 = arith.constant 0 : index
    %c0_13 = arith.constant 0 : index
    %11 = vector.load %arg4[%c1_11, %c0_12, %c0_13] : memref<2x128x128xbf16, #tpu.memory_space<vmem>>, vector<1x128x128xbf16>
    %12 = vector.shape_cast %11 : vector<1x128x128xbf16> to vector<128x128xbf16>
    %cst_14 = arith.constant dense<0.000000e+00> : vector<8x128xf32>
    %13 = tpu.matmul %10, %12, %cst_14 {dimension_numbers = #tpu.dot_dimension_numbers<[1], [0], [0], [1], [0, 0, 1, 1], [], []>} : vector<8x128xbf16>, vector<128x128xbf16>, vector<8x128xf32> -> vector<8x128xf32>
    %14 = tpu.concatenate %8, %13 in 0 : vector<56x128xf32>, vector<8x128xf32> -> vector<64x128xf32>
    %15 = arith.addf %4, %14 : vector<64x128xf32>
    %cst_15 = arith.constant dense<0.000000e+00> : vector<128xf32>
    %16 = vector.multi_reduction <add>, %15, %cst_15 [0] : vector<64x128xf32> to vector<128xf32>
    %17 = vector.shape_cast %16 : vector<128xf32> to vector<1x128xf32>
    %18 = arith.mulf %15, %15 : vector<64x128xf32>
    %cst_16 = arith.constant dense<0.000000e+00> : vector<128xf32>
    %19 = vector.multi_reduction <add>, %18, %cst_16 [0] : vector<64x128xf32> to vector<128xf32>
    %20 = vector.shape_cast %19 : vector<128xf32> to vector<1x128xf32>
    %21 = tpu.iota {dimensions = array<i32: 0>} : vector<8x128xi32>
    %c0_i32 = arith.constant 0 : i32
    %22 = vector.broadcast %c0_i32 : i32 to vector<8x128xi32>
    %23 = arith.cmpi eq, %21, %22 : vector<8x128xi32>
    %c1_i32 = arith.constant 1 : i32
    %24 = vector.broadcast %c1_i32 : i32 to vector<8x128xi32>
    %25 = arith.cmpi eq, %21, %24 : vector<8x128xi32>
    %cst_17 = arith.constant 0.000000e+00 : f32
    %26 = vector.shape_cast %20 : vector<1x128xf32> to vector<1x128xf32>
    %27 = vector.broadcast %26 : vector<1x128xf32> to vector<8x128xf32>
    %28 = vector.broadcast %cst_17 : f32 to vector<8x128xf32>
    %29 = arith.select %25, %27, %28 : vector<8x128xi1>, vector<8x128xf32>
    %30 = vector.shape_cast %17 : vector<1x128xf32> to vector<1x128xf32>
    %31 = vector.broadcast %30 : vector<1x128xf32> to vector<8x128xf32>
    %32 = arith.select %23, %31, %29 : vector<8x128xi1>, vector<8x128xf32>
    %c0_18 = arith.constant 0 : index
    %c0_19 = arith.constant 0 : index
    %c0_20 = arith.constant 0 : index
    %c0_21 = arith.constant 0 : index
    %33 = vector.load %arg6[%c0_18, %c0_19, %c0_20, %c0_21] : memref<1x1x8x128xf32, #tpu.memory_space<vmem>>, vector<1x1x8x128xf32>
    %34 = vector.shape_cast %33 : vector<1x1x8x128xf32> to vector<8x128xf32>
    %35 = vector.shape_cast %32 : vector<8x128xf32> to vector<1x1x8x128xf32>
    tpu.vector_store %arg6[%c0_18, %c0_19, %c0_20, %c0_21], %35 {strides = array<i32>} : memref<1x1x8x128xf32, #tpu.memory_space<vmem>>, vector<1x1x8x128xf32>,
    %36 = arith.truncf %15 : vector<64x128xf32> to vector<64x128xbf16>
    %c0_22 = arith.constant 0 : index
    %c0_23 = arith.constant 0 : index
    %c0_24 = arith.constant 0 : index
    %37 = vector.load %arg5[%c0_22, %c0_23, %c0_24] : memref<1x64x128xbf16, #tpu.memory_space<vmem>>, vector<1x64x128xbf16>
    %38 = vector.shape_cast %37 : vector<1x64x128xbf16> to vector<64x128xbf16>
    %39 = vector.shape_cast %36 : vector<64x128xbf16> to vector<1x64x128xbf16>
    tpu.vector_store %arg5[%c0_22, %c0_23, %c0_24], %39 {strides = array<i32>} : memref<1x64x128xbf16, #tpu.memory_space<vmem>>, vector<1x64x128xbf16>,
    return
  }
  func.func @transform_0(%arg0: i32, %arg1: i32) -> (i32, i32, i32) {
    %c0_i32 = arith.constant 0 : i32
    %c0_i32_0 = arith.constant 0 : i32
    return %arg0, %arg1, %c0_i32 : i32, i32, i32
  }
  func.func @transform_1(%arg0: i32, %arg1: i32) -> (i32, i32, i32) {
    %c1_i32 = arith.constant 1 : i32
    %0 = arith.addi %arg1, %c1_i32 : i32
    %c8_i32 = arith.constant 8 : i32
    %1 = arith.muli %0, %c8_i32 : i32
    %c0_i32 = arith.constant 0 : i32
    %c0_i32_0 = arith.constant 0 : i32
    return %arg0, %1, %c0_i32 : i32, i32, i32
  }
  func.func @transform_2(%arg0: i32, %arg1: i32) -> (i32, i32, i32) {
    %c0_i32 = arith.constant 0 : i32
    %c0_i32_0 = arith.constant 0 : i32
    %c0_i32_1 = arith.constant 0 : i32
    %c0_i32_2 = arith.constant 0 : i32
    return %c0_i32, %c0_i32_0, %c0_i32_1 : i32, i32, i32
  }
  func.func @transform_3(%arg0: i32, %arg1: i32) -> (i32, i32, i32) {
    %c0_i32 = arith.constant 0 : i32
    %c0_i32_0 = arith.constant 0 : i32
    return %arg0, %arg1, %c0_i32 : i32, i32, i32
  }
  func.func @transform_4(%arg0: i32, %arg1: i32) -> (i32, i32, i32, i32) {
    %c0_i32 = arith.constant 0 : i32
    %c0_i32_0 = arith.constant 0 : i32
    %c0_i32_1 = arith.constant 0 : i32
    return %arg0, %arg1, %c0_i32, %c0_i32_0 : i32, i32, i32, i32
  }
}

module attributes {stable_mosaic.version = 11 : i64} {
  func.func @_bn_relu_kernel(%arg0: i32, %arg1: i32, %arg2: memref<1x64x128xbf16, #tpu.memory_space<vmem>>, %arg3: memref<1x128xf32, #tpu.memory_space<vmem>>, %arg4: memref<1x128xf32, #tpu.memory_space<vmem>>, %arg5: memref<1x64x128xf32, #tpu.memory_space<vmem>>) attributes {dimension_semantics = [#tpu.dimension_semantics<parallel>, #tpu.dimension_semantics<parallel>], iteration_bounds = array<i64: 2, 1>, scalar_prefetch = 0 : i64, scratch_operands = 0 : i64, tpu.core_type = #tpu.core_type<tc>, window_params = [{transform_indices = @transform_0, window_bounds = array<i64: 1, 64, 128>}, {pipeline_mode = #tpu.pipeline_mode<synchronous>, transform_indices = @transform_1, window_bounds = array<i64: 1, 128>}, {pipeline_mode = #tpu.pipeline_mode<synchronous>, transform_indices = @transform_2, window_bounds = array<i64: 1, 128>}, {transform_indices = @transform_3, window_bounds = array<i64: 1, 64, 128>}]} {
    %c0 = arith.constant 0 : index
    %c0_0 = arith.constant 0 : index
    %c0_1 = arith.constant 0 : index
    %0 = vector.load %arg2[%c0, %c0_0, %c0_1] : memref<1x64x128xbf16, #tpu.memory_space<vmem>>, vector<1x64x128xbf16>
    %1 = vector.shape_cast %0 : vector<1x64x128xbf16> to vector<64x128xbf16>
    %2 = arith.extf %1 : vector<64x128xbf16> to vector<64x128xf32>
    %c0_2 = arith.constant 0 : index
    %c0_3 = arith.constant 0 : index
    %3 = vector.load %arg3[%c0_2, %c0_3] : memref<1x128xf32, #tpu.memory_space<vmem>>, vector<1x128xf32>
    %4 = vector.broadcast %3 : vector<1x128xf32> to vector<64x128xf32>
    %5 = arith.mulf %2, %4 : vector<64x128xf32>
    %c0_4 = arith.constant 0 : index
    %c0_5 = arith.constant 0 : index
    %6 = vector.load %arg4[%c0_4, %c0_5] : memref<1x128xf32, #tpu.memory_space<vmem>>, vector<1x128xf32>
    %7 = vector.broadcast %6 : vector<1x128xf32> to vector<64x128xf32>
    %8 = arith.addf %5, %7 : vector<64x128xf32>
    %cst = arith.constant 0.000000e+00 : f32
    %9 = vector.broadcast %cst : f32 to vector<64x128xf32>
    %10 = arith.maximumf %8, %9 : vector<64x128xf32>
    %c0_6 = arith.constant 0 : index
    %c0_7 = arith.constant 0 : index
    %c0_8 = arith.constant 0 : index
    %11 = vector.load %arg5[%c0_6, %c0_7, %c0_8] : memref<1x64x128xf32, #tpu.memory_space<vmem>>, vector<1x64x128xf32>
    %12 = vector.shape_cast %11 : vector<1x64x128xf32> to vector<64x128xf32>
    %13 = vector.shape_cast %10 : vector<64x128xf32> to vector<1x64x128xf32>
    tpu.vector_store %arg5[%c0_6, %c0_7, %c0_8], %13 {strides = array<i32>} : memref<1x64x128xf32, #tpu.memory_space<vmem>>, vector<1x64x128xf32>,
    return
  }
  func.func @transform_0(%arg0: i32, %arg1: i32) -> (i32, i32, i32) {
    %c0_i32 = arith.constant 0 : i32
    %c0_i32_0 = arith.constant 0 : i32
    return %arg0, %arg1, %c0_i32 : i32, i32, i32
  }
  func.func @transform_1(%arg0: i32, %arg1: i32) -> (i32, i32) {
    %c0_i32 = arith.constant 0 : i32
    %c0_i32_0 = arith.constant 0 : i32
    %c0_i32_1 = arith.constant 0 : i32
    return %c0_i32, %c0_i32_0 : i32, i32
  }
  func.func @transform_2(%arg0: i32, %arg1: i32) -> (i32, i32) {
    %c0_i32 = arith.constant 0 : i32
    %c0_i32_0 = arith.constant 0 : i32
    %c0_i32_1 = arith.constant 0 : i32
    return %c0_i32, %c0_i32_0 : i32, i32
  }
  func.func @transform_3(%arg0: i32, %arg1: i32) -> (i32, i32, i32) {
    %c0_i32 = arith.constant 0 : i32
    %c0_i32_0 = arith.constant 0 : i32
    return %arg0, %arg1, %c0_i32 : i32, i32, i32
  }
}

</mosaic_0001>

<bundles_post_ra>
// kernel: block_forward.3
= control target key start
LH: loop header
LB: loop body
LE: loop exit
PB: predicated region body
PF: predicated region fallthrough
CT: control target
= control target key end

     0   :  { %s461_s12 = smov 0   ;;  %s463_s13 = smov 0   ;;  %s504_s0 = inlined_call_operand.vmem [shape: bf16[2,64,128], index: 0, kind: input, shape index: {}]   ;;  %s505_s1 = inlined_call_operand.vmem [shape: f32[1,128], index: 1, kind: input, shape index: {}]   ;;  %s506_s2 = inlined_call_operand.vmem [shape: f32[1,128], index: 2, kind: input, shape index: {}]   ;;  %s507_s3 = inlined_call_operand.vmem [shape: f32[2,64,128], index: 3, kind: output, shape index: {}]  }
   0x1   :  { %s465_s14 = smov 0  }
   0x2 LB: > { %s25_s15 = sadd.s32 1, %s435_s13  ;;  %p363_p0 = scmp.ge.s32.totalorder %s439_s14, 1  ;;  %s439_s14 = sphi %s465_s14, %s13_s14   ;;  %s435_s13 = sphi %s463_s13, %s509_s13   ;;  %s431_s12 = sphi %s461_s12, %s508_s12  }
   0x3   : > { %p27_p1 = scmp.ge.s32.totalorder %s25_s15, 2  ;;  %p158_p2 = scmp.lt.s32.totalorder %s439_s14, 3 }
   0x5   : > { %s511_s15 = smov (%p27_p1, %s25_s15), 0  ;;  %p159_p3 = pnand %p363_p0, %p158_p2 }
   0x6   : > { %p191_p4 = scmp.lt.s32.totalorder (!%p159_p3), %s431_s12, 1  ;;  %v368_v0 = vld [vmem:[%s505_s1] ss:$0 sm:$0xff] (!%p159_p3) }
   0x7   : > { %162 = sbr.rel (%p159_p3) target bundleno = 30 (0x1e), region = 32  ;;  %v369_v9 = vld [vmem:[%s506_s2] ss:$0 sm:$0xff] (!%p159_p3) }
   0xe   : > { %s513_s12 = smov (!%p191_p4, %s431_s12), 1 }
   0xf   : > { %s372_s16 = sshll.u32 %s513_s12, 5  ;;  %s373_s24 = sshll.u32 %s513_s12, 6 }
  0x10   : > { %s198_s19 = scalar_lea.vmem %s504_s0, %s372_s16  ;;  %s208_s27 = scalar_lea.vmem %s507_s3, %s373_s24 }
  0x11   : > { %v375_v1 = vld [vmem:[%s198_s19] sm:$0xff]   ;;  %v390_v2 = vld [vmem:[%s198_s19 + $0x8] sm:$0xff]   ;;  %v391_v3 = vld [vmem:[%s198_s19 + $0x10] sm:$0xff]  }
  0x12   : > { %v376_v4 = vunpack.c.l.bf16 %v375_v1  ;;  %v377_v5 = vunpack.c.h.bf16 %v375_v1  ;;  %v380_v6 = vunpack.c.l.bf16 %v390_v2  ;;  %v381_v7 = vunpack.c.h.bf16 %v390_v2  ;;  %v392_v8 = vld [vmem:[%s198_s19 + $0x18] sm:$0xff]  }
  0x13   : > { %v384_v10 = vunpack.c.l.bf16 %v391_v3  ;;  %v385_v11 = vunpack.c.h.bf16 %v391_v3  ;;  %v388_v12 = vunpack.c.l.bf16 %v392_v8  ;;  %v389_v13 = vunpack.c.h.bf16 %v392_v8 }
  0x14   : > { %v233_v14 = vmul.f32 %v376_v4, %v368_v0  ;;  %v234_v15 = vmul.f32 %v377_v5, %v368_v0  ;;  %v235_v16 = vmul.f32 %v380_v6, %v368_v0  ;;  %v236_v17 = vmul.f32 %v381_v7, %v368_v0 }
  0x15   : > { %v237_v18 = vmul.f32 %v384_v10, %v368_v0  ;;  %v238_v19 = vmul.f32 %v385_v11, %v368_v0  ;;  %v239_v20 = vmul.f32 %v388_v12, %v368_v0  ;;  %v240_v21 = vmul.f32 %v389_v13, %v368_v0 }
  0x16   : > { %v248_v22 = vadd.f32 %v369_v9, %v233_v14  ;;  %v249_v23 = vadd.f32 %v369_v9, %v234_v15  ;;  %v250_v24 = vadd.f32 %v369_v9, %v235_v16  ;;  %v251_v25 = vadd.f32 %v369_v9, %v236_v17 }
  0x17   : > { %v252_v26 = vadd.f32 %v369_v9, %v237_v18  ;;  %v253_v27 = vadd.f32 %v369_v9, %v238_v19  ;;  %v254_v28 = vadd.f32 %v369_v9, %v239_v20  ;;  %v255_v29 = vadd.f32 %v369_v9, %v240_v21 }
  0x18   : > { %v256_v30 = vmax.f32 %v248_v22, 0.0  ;;  %v257_v31 = vmax.f32 %v249_v23, 0.0  ;;  %v258_v32 = vmax.f32 %v250_v24, 0.0  ;;  %v259_v33 = vmax.f32 %v251_v25, 0.0 }
  0x19   : > { %v260_v34 = vmax.f32 %v252_v26, 0.0  ;;  %v261_v35 = vmax.f32 %v253_v27, 0.0  ;;  %v262_v36 = vmax.f32 %v254_v28, 0.0  ;;  %v263_v37 = vmax.f32 %v255_v29, 0.0 }
  0x1a   : > { %264 = vst [vmem:[%s208_s27] sm:$0xff] %v256_v30  ;;  %265 = vst [vmem:[%s208_s27 + $0x8] sm:$0xff] %v257_v31 }
  0x1b   : > { %266 = vst [vmem:[%s208_s27 + $0x10] sm:$0xff] %v258_v32  ;;  %267 = vst [vmem:[%s208_s27 + $0x18] sm:$0xff] %v259_v33 }
  0x1c   : > { %268 = vst [vmem:[%s208_s27 + $0x20] sm:$0xff] %v260_v34  ;;  %269 = vst [vmem:[%s208_s27 + $0x28] sm:$0xff] %v261_v35 }
  0x1d   : > { %270 = vst [vmem:[%s208_s27 + $0x30] sm:$0xff] %v262_v36  ;;  %271 = vst [vmem:[%s208_s27 + $0x38] sm:$0xff] %v263_v37 }
  0x1e PF: > { %s13_s14 = sadd.s32 1, %s439_s14   ;;  %s508_s12 = smov %s435_s13 }
  0x1f   : > { %p10_p5 = scmp.ge.s32.totalorder %s13_s14, 4   ;;  %s509_s13 = smov %s511_s15 }
  0x21   :  { %12 = sbr.rel (!%p10_p5) target bundleno = 2 (0x2), region = 62 }

// kernel: block_forward.2
= control target key start
LH: loop header
LB: loop body
LE: loop exit
PB: predicated region body
PF: predicated region fallthrough
CT: control target
= control target key end

     0   :  { %s1191_s15 = smov 0   ;;  %s1193_s16 = smov 0   ;;  %s1328_s0 = inlined_call_operand.vmem [shape: bf16[2,72,128], index: 0, kind: input, shape index: {}, may-alias: {0,1}]   ;;  %s1329_s1 = inlined_call_operand.vmem [shape: bf16[2,72,128], index: 1, kind: input, shape index: {}, may-alias: {0,1}]   ;;  %s1330_s2 = inlined_call_operand.vmem [shape: bf16[2,128,128], index: 2, kind: input, shape index: {}]   ;;  %s1331_s3 = inlined_call_operand.vmem [shape: bf16[2,64,128], index: 3, kind: output, shape index: {0}]   ;;  %s1332_s4 = inlined_call_operand.vmem [shape: f32[2,1,8,128], index: 4, kind: output, shape index: {1}]  }
   0x1   :  { %s1195_s17 = smov 0  }
   0x2 LB: > { %s27_s18 = sadd.s32 1, %s1158_s16  ;;  %p892_p0 = scmp.ge.s32.totalorder %s1162_s17, 1  ;;  %s1162_s17 = sphi %s1195_s17, %s15_s17   ;;  %s1158_s16 = sphi %s1193_s16, %s1334_s16   ;;  %s1154_s15 = sphi %s1191_s15, %s1333_s15  }
   0x3   : > { %p29_p1 = scmp.ge.s32.totalorder %s27_s18, 2  ;;  %p219_p2 = scmp.lt.s32.totalorder %s1162_s17, 3 }
   0x5   : > { %s1336_s18 = smov (%p29_p1, %s27_s18), 0  ;;  %p220_p3 = pnand %p892_p0, %p219_p2 }
   0x6   : > { %v1212_v0 = vld [vmem:[%s1330_s2 + $0x40] sm:$0xff] (!%p220_p3)   ;;  %p279_p4 = scmp.lt.s32.totalorder (!%p220_p3), %s1154_s15, 1  ;;  %v1221_v2 = vld [vmem:[%s1330_s2 + $0x48] sm:$0xff] (!%p220_p3)   ;;  %v1233_v4 = vld [vmem:[%s1330_s2 + $0x50] sm:$0xff] (!%p220_p3)   ;;  %v1164_v27 = vmov (!%p220_p3), 0.0   ;;  %vm1165_vm0 = vmmov (!%p220_p3), 0  }
   0x7   : > { %223 = sbr.rel (%p220_p3) target bundleno = 304 (0x130), region = 32  ;;  %v1117_v1 = vld [vmem:[%s1330_s2] sm:$0xff] (!%p220_p3)   ;;  %1015 = vmatprep.subr.bf16.mxu1 (!%p220_p3), %v1212_v0  ;;  %v1119_v3 = vld [vmem:[%s1330_s2 + $0x8] sm:$0xff] (!%p220_p3)   ;;  %v1121_v5 = vld [vmem:[%s1330_s2 + $0x10] sm:$0xff] (!%p220_p3)  }
   0x8   : > { %1059 = vmatprep.subr.bf16.mxu0 (!%p220_p3), %v1117_v1  ;;  %1016 = vmatpush3.bf16.msra.mxu1 (!%p220_p3), %v1212_v0  ;;  %v1243_v6 = vld [vmem:[%s1330_s2 + $0x58] sm:$0xff] (!%p220_p3)   ;;  %v1254_v8 = vld [vmem:[%s1330_s2 + $0x60] sm:$0xff] (!%p220_p3)   ;;  %v1126_v10 = vld [vmem:[%s1330_s2 + $0x68] sm:$0xff] (!%p220_p3)  }
   0x9   : > { %1060 = vmatpush3.bf16.msra.mxu0 (!%p220_p3), %v1117_v1  ;;  %1017 = vmatprep.subr.bf16.mxu1 (!%p220_p3), %v1221_v2  ;;  %v1123_v7 = vld [vmem:[%s1330_s2 + $0x18] sm:$0xff] (!%p220_p3)   ;;  %v1125_v9 = vld [vmem:[%s1330_s2 + $0x20] sm:$0xff] (!%p220_p3)   ;;  %v1127_v13 = vld [vmem:[%s1330_s2 + $0x28] sm:$0xff] (!%p220_p3)  }
   0xa   : > { %1061 = vmatprep.subr.bf16.mxu0 (!%p220_p3), %v1119_v3  ;;  %v1128_v17 = vld [vmem:[%s1330_s2 + $0x70] sm:$0xff] (!%p220_p3)   ;;  %v1130_v19 = vld [vmem:[%s1330_s2 + $0x78] sm:$0xff] (!%p220_p3)  }
   0xb   : > { %v1129_v18 = vld [vmem:[%s1330_s2 + $0x30] sm:$0xff] (!%p220_p3)   ;;  %v1131_v20 = vld [vmem:[%s1330_s2 + $0x38] sm:$0xff] (!%p220_p3)  }
   0xc   : > { %1018 = vmatpush3.bf16.msra.mxu1 (!%p220_p3), %v1221_v2 }
   0xd   : > { %1062 = vmatpush3.bf16.msra.mxu0 (!%p220_p3), %v1119_v3  ;;  %1019 = vmatprep.subr.bf16.mxu1 (!%p220_p3), %v1233_v4 }
   0xe   : > { %s1338_s15 = smov (!%p279_p4, %s1154_s15), 1  ;;  %1063 = vmatprep.subr.bf16.mxu0 %v1121_v5 }
   0xf   : > { %s1087_s9 = smul.u32 36, %s1338_s15  ;;  %s950_s12 = sshll.u32 %s1338_s15, 5 }
  0x10   : > { %1020 = vmatpush3.bf16.msra.mxu1 %v1233_v4  ;;  %s1309_s14 = scalar_lea.vmem %s1331_s3, %s950_s12  ;;  %s897_s19 = sshll.u32 %s1338_s15, 3 }
  0x11   : > { %1064 = vmatpush3.bf16.msra.mxu0 %v1121_v5  ;;  %1021 = vmatprep.subr.bf16.mxu1 %v1243_v6  ;;  %s1264_s20 = scalar_lea.vmem %s1328_s0, %s1087_s9  ;;  %s949_s7 = sadd.s32 32, %s1087_s9 }
  0x12   : > { %1065 = vmatprep.subr.bf16.mxu0 %v1123_v7  ;;  %v323_v11 = vld [vmem:[%s1264_s20 + $0x4] sm:$0xf]  ;;  %v324_v12 = vld [vmem:[%s1264_s20 + $0x8] sm:$0xf]  ;;  %v322_v15 = vld [vmem:[%s1264_s20] sm:$0xf]  ;;  %s301_s11 = scalar_lea.vmem %s1329_s1, %s949_s7  ;;  %s320_s22 = scalar_lea.vmem %s1332_s4, %s897_s19 }
  0x13   : > { %v914_v14 = vcombine.low %v323_v11, %v324_v12  ;;  %v926_v16 = vcombine.low %v322_v15, %v323_v11  ;;  %v325_v21 = vld [vmem:[%s1264_s20 + $0xc] sm:$0xf]  ;;  %v326_v22 = vld [vmem:[%s1264_s20 + $0x10] sm:$0xf]  ;;  %v327_v23 = vld [vmem:[%s1264_s20 + $0x14] sm:$0xf] }
  0x14   : > { %1022 = vmatpush3.bf16.msra.mxu1 %v1243_v6  ;;  %v328_v24 = vld [vmem:[%s1264_s20 + $0x18] sm:$0xf]  ;;  %v915_v25 = vcombine.low %v325_v21, %v326_v22  ;;  %v927_v26 = vcombine.low %v324_v12, %v325_v21  ;;  %v928_v29 = vcombine.low %v326_v22, %v327_v23  ;;  %v329_v30 = vld [vmem:[%s1264_s20 + $0x1c] sm:$0xf]  ;;  %v497_v33 = vld [vmem:[%s301_s11] sm:$0xf] }
  0x15   : > { %1066 = vmatpush3.bf16.msra.mxu0 %v1123_v7  ;;  %1023 = vmatprep.subr.bf16.mxu1 %v1254_v8  ;;  %v916_v28 = vcombine.low %v327_v23, %v328_v24  ;;  %v917_v31 = vcombine.low %v329_v30, %v329_v30  ;;  %v929_v32 = vcombine.low %v328_v24, %v329_v30 }
  0x16   : > { %1067 = vmatprep.subr.bf16.mxu0 %v1125_v9  ;;  %1031 = vmatprep.mubr.bf16.mxu1 %v914_v14 }
  0x17   : > { %1075 = vmatprep.mubr.bf16.mxu0 %v926_v16 }
  0x18   : > { %1024 = vmatpush3.bf16.msra.mxu1 %v1254_v8 }
  0x19   : > { %1068 = vmatpush3.bf16.msra.mxu0 %v1125_v9  ;;  %1025 = vmatprep.subr.bf16.mxu1 %v1126_v10 }
  0x1a   : > { %1069 = vmatprep.subr.bf16.mxu0 %v1127_v13 }
  0x1c   : > { %1026 = vmatpush3.bf16.msra.mxu1 %v1126_v10 }
  0x1d   : > { %1070 = vmatpush3.bf16.msra.mxu0 %v1127_v13  ;;  %1027 = vmatprep.subr.bf16.mxu1 %v1128_v17 }
  0x1e   : > { %1071 = vmatprep.subr.bf16.mxu0 %v1129_v18 }
  0x20   : > { %1028 = vmatpush3.bf16.msra.mxu1 %v1128_v17 }
  0x21   : > { %1072 = vmatpush3.bf16.msra.mxu0 %v1129_v18  ;;  %1029 = vmatprep.subr.bf16.mxu1 %v1130_v19 }
  0x22   : > { %1073 = vmatprep.subr.bf16.mxu0 %v1131_v20 }
  0x24   : > { %1030 = vmatpush3.bf16.msra.mxu1 %v1130_v19 }
  0x25   : > { %1074 = vmatpush3.bf16.msra.mxu0 %v1131_v20  ;;  %1039 = vmatprep.subr.bf16.mxu1 %v1164_v27 }
  0x27   : > { %1032 = vmatmul.mubr.bf16.vlgmr.msra.gmra.mrb[0].mxu1 %v915_v25 }
  0x28   : > { %1076 = vmatmul.mubr.bf16.vlgmr.msra.gmra.mrb[0].mxu0 %v927_v26  ;;  %1040 = vmatpush3.bf16.msra.mxu1 %v1212_v0 }
  0x29   : > { %1041 = vmatprep.subr.bf16.mxu1 %v1164_v27  ;;  %1035 = vmatprep.mubr.bf16.mxu1 %v916_v28 }
  0x2a   : > { %1079 = vmatprep.mubr.bf16.mxu0 %v928_v29 }
  0x2c   : > { %1042 = vmatpush3.bf16.msra.mxu1 %v1221_v2 }
  0x2d   : > { %1043 = vmatprep.subr.bf16.mxu1 %v1164_v27 }
  0x2f   : > { %1036 = vmatmul.mubr.bf16.gmra.mrb[4].mxu1 %v917_v31 }
  0x30   : > { %1080 = vmatmul.mubr.bf16.gmra.mrb[4].mxu0 %v929_v32  ;;  %1044 = vmatpush3.bf16.msra.mxu1 %v1233_v4 }
  0x31   : > { %1045 = vmatprep.subr.bf16.mxu1 %v1164_v27  ;;  %1055 = vmatprep.mubr.msk.bf16.mxu1 %vm1165_vm0, %v1164_v27 }
  0x34   : > { %1046 = vmatpush3.bf16.msra.mxu1 %v1243_v6 }
  0x35   : > { %1047 = vmatprep.subr.bf16.mxu1 %v1164_v27 }
  0x38   : > { %1048 = vmatpush3.bf16.msra.mxu1 %v1254_v8 }
  0x39   : > { %1049 = vmatprep.subr.bf16.mxu1 %v1164_v27 }
  0x3c   : > { %1050 = vmatpush3.bf16.msra.mxu1 %v1126_v10 }
  0x3d   : > { %1051 = vmatprep.subr.bf16.mxu1 %v1164_v27 }
  0x40   : > { %1052 = vmatpush3.bf16.msra.mxu1 %v1128_v17 }
  0x41   : > { %1053 = vmatprep.subr.bf16.mxu1 %v1164_v27  ;;  %v695_v27 = vlaneseq }
  0x43   : > { %v696_v32 = vshrl.u32 %v695_v27, 7 }
  0x44   : > { %1054 = vmatpush3.bf16.msra.mxu1 %v1130_v19 }
  0x45   : > { %vm698_vm1 = vcmp.eq.s32.totalorder %v696_v32, 1  ;;  %vm697_vm2 = vcmp.eq.s32.totalorder %v696_v32, 0 }
  0x47   : > { %1056 = vmatmul.mubr.bf16.vlgmr.msra.gmra.mrb[8].mxu1 %v497_v33 }
  0xfa   : > { %v1033_v34 = vpop.f32.mrb[0].mxu1 }
  0xfb   : > { %v1077_v35 = vpop.f32.mrb[0].mxu0  ;;  %v467_v36 = vpop.f32.mrb[1].mxu1 }
  0xfc   : > { %v639_v37 = vadd.f32 %v1077_v35, %v1033_v34  ;;  %v630_v38 = vpop.f32.mrb[1].mxu0  ;;  %v1034_v39 = vpop.f32.mrb[2].mxu1 }
  0xfd   : > { %v631_v40 = vadd.f32 %v630_v38, %v467_v36  ;;  %v1078_v41 = vpop.f32.mrb[2].mxu0  ;;  %v470_v42 = vpop.f32.mrb[3].mxu1 }
  0xfe   : > { %v642_v43 = vadd.f32 %v1078_v41, %v1034_v39  ;;  %v633_v44 = vpop.f32.mrb[3].mxu0  ;;  %v676_v52 = vmul.f32 %v639_v37, %v639_v37 }
  0xff   : > { %v634_v45 = vadd.f32 %v633_v44, %v470_v42  ;;  %v674_v47 = vmul.f32 %v631_v40, %v631_v40 }
 0x100   : > { %v967_v46 = vpack.c.bf16 %v642_v43, %v639_v37  ;;  %v677_v60 = vmul.f32 %v642_v43, %v642_v43 }
 0x101   : > { %v661_v48 = vadd.f32 %v634_v45, %v631_v40  ;;  %v675_v49 = vmul.f32 %v634_v45, %v634_v45  ;;  %v962_v50 = vpack.c.bf16 %v634_v45, %v631_v40 }
 0x102   : > { %979 = vst [vmem:[%s1309_s14 + $0x8] sm:$0xff] %v967_v46   ;;  %v1037_v51 = vpop.f32.mrb[4].mxu1 }
 0x103   : > { %v662_v53 = vadd.f32 %v661_v48, %v639_v37  ;;  %v682_v54 = vadd.f32 %v675_v49, %v674_v47  ;;  %963 = vst [vmem:[%s1309_s14] sm:$0xff] %v962_v50   ;;  %v1081_v55 = vpop.f32.mrb[4].mxu0  ;;  %v483_v56 = vpop.f32.mrb[5].mxu1 }
 0x104   : > { %v655_v57 = vadd.f32 %v1081_v55, %v1037_v51  ;;  %v646_v58 = vpop.f32.mrb[5].mxu0  ;;  %v1038_v59 = vpop.f32.mrb[6].mxu1 }
 0x105   : > { %v683_v61 = vadd.f32 %v682_v54, %v676_v52  ;;  %v647_v62 = vadd.f32 %v646_v58, %v483_v56  ;;  %v663_v63 = vadd.f32 %v662_v53, %v642_v43  ;;  %v1082_v0 = vpop.f32.mrb[6].mxu0  ;;  %v486_v1 = vpop.f32.mrb[7].mxu1 }
 0x106   : > { %v649_v2 = vpop.f32.mrb[7].mxu0  ;;  %v680_v7 = vmul.f32 %v655_v57, %v655_v57 }
 0x107   : > { %v664_v3 = vadd.f32 %v663_v63, %v647_v62  ;;  %v678_v4 = vmul.f32 %v647_v62, %v647_v62  ;;  %v684_v5 = vadd.f32 %v683_v61, %v677_v60  ;;  %v650_v6 = vadd.f32 %v649_v2, %v486_v1 }
 0x109   : > { %v685_v8 = vadd.f32 %v684_v5, %v678_v4  ;;  %v665_v9 = vadd.f32 %v664_v3, %v650_v6  ;;  %v679_v10 = vmul.f32 %v650_v6, %v650_v6  ;;  %v972_v11 = vpack.c.bf16 %v650_v6, %v647_v62 }
 0x10b   : > { %v686_v12 = vadd.f32 %v685_v8, %v679_v10  ;;  %980 = vst [vmem:[%s1309_s14 + $0x10] sm:$0xff] %v972_v11   ;;  %v666_v13 = vadd.f32 %v665_v9, %v655_v57 }
 0x10d   : > { %v687_v14 = vadd.f32 %v686_v12, %v680_v7 }
 0x11a   : > { %v532_v15 = vpop.f32.mrb[8].mxu1 }
 0x11b   : > { %v658_v16 = vadd.f32 %v1082_v0, %v532_v15  ;;  %v1057_v17 = vpop.f32.mrb[9].mxu1 }
 0x11c   : > { %v535_v18 = vpop.f32.mrb[10].mxu1 }
 0x11d   : > { %v667_v19 = vadd.f32 %v666_v13, %v658_v16  ;;  %v681_v20 = vmul.f32 %v658_v16, %v658_v16  ;;  %v977_v21 = vpack.c.bf16 %v658_v16, %v655_v57  ;;  %v1058_v22 = vpop.f32.mrb[11].mxu1 }
 0x11f   : > { %v668_v23 = vrot.slane %v667_v19, 4  ;;  %v688_v24 = vadd.f32 %v687_v14, %v681_v20  ;;  %981 = vst [vmem:[%s1309_s14 + $0x18] sm:$0xff] %v977_v21  }
 0x121   : > { %v669_v25 = vadd.f32 %v668_v23, %v667_v19  ;;  %v689_v26 = vrot.slane %v688_v24, 4 }
 0x123   : > { %v670_v28 = vrot.slane %v669_v25, 2  ;;  %v690_v29 = vadd.f32 %v689_v26, %v688_v24 }
 0x125   : > { %v671_v30 = vadd.f32 %v670_v28, %v669_v25  ;;  %v691_v31 = vrot.slane %v690_v29, 2 }
 0x127   : > { %v692_v33 = vadd.f32 %v691_v31, %v690_v29  ;;  %v672_v34 = vrot.slane %v671_v30, 1 }
 0x129   : > { %v693_v35 = vrot.slane %v692_v33, 1  ;;  %v673_v37 = vadd.f32 %v672_v34, %v671_v30 }
 0x12b   : > { %v694_v36 = vadd.f32 %v693_v35, %v692_v33 }
 0x12d   : > { %v699_v38 = vsel %vm698_vm1, %v694_v36, 0.0 }
 0x12e   : > { %v700_v39 = vsel %vm697_vm2, %v673_v37, %v699_v38 }
 0x12f   : > { %701 = vst [vmem:[%s320_s22] sm:$0xff] %v700_v39 }
 0x130 PF: > { %s15_s17 = sadd.s32 1, %s1162_s17   ;;  %s1333_s15 = smov %s1158_s16 }
 0x131   : > { %p12_p5 = scmp.ge.s32.totalorder %s15_s17, 4   ;;  %s1334_s16 = smov %s1336_s18 }
 0x133   :  { %14 = sbr.rel (!%p12_p5) target bundleno = 2 (0x2), region = 78 }

</bundles_post_ra>
